<compile_context>
chip_gen: v6e
topology: v6e:2x2x1
jax: 0.10.0
libtpu: 0.0.40
codegen_flags: <defaults>
</compile_context>

<pallas_src>
import math
import jax
import jax.numpy as jnp
from jax import lax
from jax.experimental import pallas as pl
from jax.experimental.pallas import tpu as pltpu


def _round_up(x, m):
    return ((x + m - 1) // m) * m


def _row_block(n):
    # Single full-height block for small/medium graphs (any n is legal when the block
    # equals the full dim); 128-row tiles (8-aligned), pipelined + megacore-parallel,
    # for large graphs.  Out-of-bounds rows of a partial last block are computed on
    # padded data but never written back (row-wise independent math), so it is safe.
    return n if n <= 256 else 128


_VMEM = pl.BlockSpec(memory_space=pltpu.MemorySpace.VMEM)


# ----------------------------------------------------------------------------- #
# Kernel 1: input Linear + LeakyReLU(0.01), fused with the first GAT projection
#           h0 = LeakyReLU(x @ W_in + b_in) @ W_gat0
# ----------------------------------------------------------------------------- #
def input_linear_project(x, w_in, b_in, w_gat0, slope=0.01):
    N = x.shape[0]
    DP = w_in.shape[1]

    def kernel(x_ref, w_ref, b_ref, wg_ref, h_ref):
        y = jnp.dot(x_ref[...], w_ref[...], preferred_element_type=jnp.float32) + b_ref[...]
        y = jnp.where(y > 0, y, slope * y)
        h_ref[...] = jnp.dot(y, wg_ref[...], preferred_element_type=jnp.float32)

    return pl.pallas_call(
        kernel,
        out_shape=jax.ShapeDtypeStruct((N, DP), jnp.float32),
        in_specs=[_VMEM] * 4,
        out_specs=_VMEM,
    )(x, w_in, b_in, w_gat0)


# ----------------------------------------------------------------------------- #
# Kernel 2 (fused per-layer): GATConv (heads=1, add_self_loops=False) attention +
# aggregation + bias, LayerNorm(eps=1e-5) over the real D features + LeakyReLU(0.01),
# and the TopKPooling score tanh(<y, w>/||w||).  Tiled over destination-row blocks.
# ----------------------------------------------------------------------------- #
def gat_norm_score(h, adj, att_src, att_dst, bias, gamma, beta, topk_w, d_real,
                   gat_slope=0.2, act_slope=0.01, ln_eps=1e-5):
    N, DP = h.shape
    BM = _row_block(N)
    nblk = pl.cdiv(N, BM)
    inv_d = 1.0 / float(d_real)

    def kernel(adj_ref, h_all_ref, h_blk_ref, as_ref, ad_ref, b_ref,
               g_ref, be_ref, w_ref, y_ref, s_ref):
        h_all = h_all_ref[...]                                            # [N, DP] resident
        # a_src[j] = <h_j, att_src> as a lane row (single M=1 matmul on resident h)
        a_src = lax.dot_general(as_ref[...], h_all, (((1,), (1,)), ((), ())),
                                preferred_element_type=jnp.float32)       # [1, N]
        # a_dst for this destination-row block (VPU reduce; keeps the MXU free)
        a_dst = jnp.sum(h_blk_ref[...] * ad_ref[...], axis=-1, keepdims=True)  # [BM, 1]
        e = a_dst + a_src                                                 # [BM, N]
        e = jnp.where(e > 0, e, gat_slope * e)                            # LeakyReLU(0.2)
        mask = adj_ref[...].astype(jnp.float32) > 0.0
        e = jnp.where(mask, e, -1e30)
        m = jnp.max(e, axis=-1, keepdims=True)
        m = jnp.where(m > -1e29, m, 0.0)                                  # rows w/o in-edges
        p = jnp.where(mask, jnp.exp(e - m), 0.0)                          # [BM, N]
        denom = jnp.sum(p, axis=-1, keepdims=True)
        inv = pl.reciprocal(jnp.maximum(denom, 1e-16), approx=True)       # EUP slot
        # fold 1/denom after the aggregation matmul: scales [BM,DP] instead of [BM,N]
        out = jnp.dot(p, h_all, preferred_element_type=jnp.float32) * inv + b_ref[...]
        # LayerNorm over the real d features (padding lanes of `out` are exactly 0)
        mu = jnp.sum(out, axis=-1, keepdims=True) * inv_d
        var = jnp.maximum(jnp.sum(out * out, axis=-1, keepdims=True) * inv_d - mu * mu, 0.0)
        y = (out - mu) * lax.rsqrt(var + ln_eps) * g_ref[...] + be_ref[...]
        y = jnp.where(y > 0, y, act_slope * y)                            # LeakyReLU(0.01)
        y_ref[...] = y
        # TopKPooling score: tanh(<y, w> / ||w||)
        w = w_ref[...]
        s = jnp.sum(y * w, axis=-1, keepdims=True) * lax.rsqrt(
            jnp.sum(w * w, axis=-1, keepdims=True) + 1e-16)
        s_ref[...] = jnp.tanh(s)

    resident = lambda i: (0, 0)
    cost = pl.CostEstimate(
        flops=int(2 * N * N * DP + 6 * N * N + 16 * N * DP),
        transcendentals=int(N * N + 2 * N),
        bytes_accessed=int(N * N * adj.dtype.itemsize + 3 * N * DP * 4 + N * 4),
    )
    return pl.pallas_call(
        kernel,
        out_shape=(jax.ShapeDtypeStruct((N, DP), jnp.float32),
                   jax.ShapeDtypeStruct((N, 1), jnp.float32)),
        grid_spec=pltpu.PrefetchScalarGridSpec(
            num_scalar_prefetch=0,
            grid=(nblk,),
            in_specs=[
                pl.BlockSpec((BM, N), lambda i: (i, 0)),    # adj rows: dominant, pipelined DMA
                pl.BlockSpec((N, DP), resident),            # h resident across the grid
                pl.BlockSpec((BM, DP), lambda i: (i, 0)),   # h rows of this dst block
                pl.BlockSpec((1, DP), resident),            # att_src
                pl.BlockSpec((1, DP), resident),            # att_dst
                pl.BlockSpec((1, DP), resident),            # GAT bias
                pl.BlockSpec((1, DP), resident),            # LayerNorm gamma
                pl.BlockSpec((1, DP), resident),            # LayerNorm beta
                pl.BlockSpec((1, DP), resident),            # TopK weight
            ],
            out_specs=[
                pl.BlockSpec((BM, DP), lambda i: (i, 0)),
                pl.BlockSpec((BM, 1), lambda i: (i, 0)),
            ],
        ),
        compiler_params=pltpu.CompilerParams(
            dimension_semantics=("parallel",),              # shard dst blocks across TCs (v7x)
            vmem_limit_bytes=64 * 1024 * 1024,
        ),
        cost_estimate=cost,
    )(adj, h, h, att_src, att_dst, bias, gamma, beta, topk_w)


# ----------------------------------------------------------------------------- #
# Kernel 3 (fused pooling): x_new = y[perm] * score[perm], adj_new = adj[perm][:,perm],
# and (for non-final layers) h_next = x_new @ W_next.  The permutation is applied with
# a one-hot selection matrix built in-kernel from perm (no XLA gather) and MXU matmuls.
# ----------------------------------------------------------------------------- #
def topk_pool_apply(y, adj, perm, vals, w_next=None):
    N, DP = y.shape
    K = int(perm.shape[0])
    perm2 = perm.astype(jnp.int32).reshape(K, 1)
    vals2 = vals.astype(jnp.float32).reshape(K, 1)

    def pool_core(perm_ref, vals_ref, y_ref, adj_ref):
        # P[a, i] = 1.0 iff perm[a] == i
        P = (lax.broadcasted_iota(jnp.int32, (K, N), 1) == perm_ref[...]).astype(jnp.float32)
        xn = jnp.dot(P, y_ref[...], preferred_element_type=jnp.float32) * vals_ref[...]
        t = jnp.dot(P, adj_ref[...].astype(jnp.float32), preferred_element_type=jnp.float32)
        an = lax.dot_general(t, P, (((1,), (1,)), ((), ())),
                             preferred_element_type=jnp.float32).astype(jnp.bfloat16)
        return xn, an

    cost = pl.CostEstimate(
        flops=int(2 * K * N * DP + 2 * K * N * N + 2 * K * K * N),
        transcendentals=0,
        bytes_accessed=int(N * DP * 4 + N * N * adj.dtype.itemsize
                           + K * DP * 4 + K * K * 2),
    )

    # TODO(synk): this pooling kernel is single-block; for very large graphs it would
    #             need the same dst-row tiling as the attention kernel.
    if w_next is None:
        def kernel(perm_ref, vals_ref, y_ref, adj_ref, x_ref, a_ref):
            xn, an = pool_core(perm_ref, vals_ref, y_ref, adj_ref)
            x_ref[...] = xn
            a_ref[...] = an
        return pl.pallas_call(
            kernel,
            out_shape=(jax.ShapeDtypeStruct((K, DP), jnp.float32),
                       jax.ShapeDtypeStruct((K, K), jnp.bfloat16)),
            in_specs=[_VMEM] * 4,
            out_specs=(_VMEM, _VMEM),
            compiler_params=pltpu.CompilerParams(vmem_limit_bytes=64 * 1024 * 1024),
            cost_estimate=cost,
        )(perm2, vals2, y, adj)

    def kernel(perm_ref, vals_ref, y_ref, adj_ref, w_ref, x_ref, a_ref, h_ref):
        xn, an = pool_core(perm_ref, vals_ref, y_ref, adj_ref)
        x_ref[...] = xn
        a_ref[...] = an
        h_ref[...] = jnp.dot(xn, w_ref[...], preferred_element_type=jnp.float32)

    return pl.pallas_call(
        kernel,
        out_shape=(jax.ShapeDtypeStruct((K, DP), jnp.float32),
                   jax.ShapeDtypeStruct((K, K), jnp.bfloat16),
                   jax.ShapeDtypeStruct((K, DP), jnp.float32)),
        in_specs=[_VMEM] * 5,
        out_specs=(_VMEM, _VMEM, _VMEM),
        compiler_params=pltpu.CompilerParams(vmem_limit_bytes=64 * 1024 * 1024),
        cost_estimate=cost,
    )(perm2, vals2, y, adj, w_next)


# ----------------------------------------------------------------------------- #
# Model
# ----------------------------------------------------------------------------- #
class GraphEncoderNormPoolingPallas:
    """Graph_Encoder_Norm_Pooling with layer_type='gat', directed=False, num_heads=1."""

    def __init__(self, num_features, embedding_size=32, num_layers=4, key=None):
        if key is None:
            key = jax.random.PRNGKey(0)
        self.num_layers = num_layers
        self.D = embedding_size
        self.DP = _round_up(max(embedding_size, 1), 128)   # lane-dense feature axis
        DP = self.DP

        def glorot(k, shape):
            fan_in, fan_out = shape[0], shape[-1]
            s = math.sqrt(6.0 / (fan_in + fan_out))
            return jax.random.uniform(k, shape, jnp.float32, -s, s)

        def pad_row(v):                       # [d] -> [1, DP], zero padding
            return jnp.pad(v.reshape(1, -1), ((0, 0), (0, DP - v.shape[-1])))

        def pad_cols(m):                      # [a, d] -> [a, DP]
            return jnp.pad(m, ((0, 0), (0, DP - m.shape[-1])))

        def pad_sq(m):                        # [d, d] -> [DP, DP]
            return jnp.pad(m, ((0, DP - m.shape[0]), (0, DP - m.shape[1])))

        keys = jax.random.split(key, 2 + num_layers)
        self.W_in = pad_cols(glorot(keys[0], (num_features, embedding_size)))
        self.b_in = pad_row(0.01 * jax.random.normal(keys[1], (embedding_size,), jnp.float32))

        self.layers = []
        for l in range(num_layers):
            k0, k1, k2, k3 = jax.random.split(keys[2 + l], 4)
            self.layers.append(dict(
                W=pad_sq(glorot(k0, (embedding_size, embedding_size))),      # GAT lin
                att_src=pad_row(glorot(k1, (1, embedding_size)).reshape(-1)),
                att_dst=pad_row(glorot(k2, (1, embedding_size)).reshape(-1)),
                bias=pad_row(jnp.zeros((embedding_size,), jnp.float32)),     # GAT bias
                gamma=pad_row(jnp.ones((embedding_size,), jnp.float32)),     # LayerNorm weight
                beta=pad_row(jnp.zeros((embedding_size,), jnp.float32)),     # LayerNorm bias
                topk_w=pad_row(glorot(k3, (1, embedding_size)).reshape(-1)), # TopKPooling weight
            ))

    def __call__(self, x, edge_index):
        N = x.shape[0]
        D = self.D
        # dense bf16 adjacency: A[dst, src] = 1 for edge src -> dst (PyG 'source_to_target')
        adj_cur = jnp.zeros((N, N), jnp.bfloat16).at[edge_index[1], edge_index[0]].set(1.0)

        # input Linear + LeakyReLU, fused with the first GAT projection
        h = input_linear_project(x, self.W_in, self.b_in, self.layers[0]["W"])

        layer_data = []
        batch = jnp.zeros((N,), jnp.int32)
        x_cur = None
        for l in range(self.num_layers):
            p = self.layers[l]
            y, score = gat_norm_score(h, adj_cur, p["att_src"], p["att_dst"], p["bias"],
                                      p["gamma"], p["beta"], p["topk_w"], D)
            # TODO(synk): F.dropout(p=0.3) is the identity in eval mode; training-mode
            #             dropout (random mask) is not implemented here.
            n_cur = y.shape[0]
            k = int(math.ceil(0.8 * n_cur))
            vals, perm = lax.top_k(score[:, 0], k)       # data-dependent selection: glue
            w_next = self.layers[l + 1]["W"] if l + 1 < self.num_layers else None
            pooled = topk_pool_apply(y, adj_cur, perm, vals, w_next)
            if w_next is None:
                x_cur, adj_cur = pooled
                h = None
            else:
                x_cur, adj_cur, h = pooled
            batch = jnp.zeros((k,), jnp.int32)
            layer_data.append((x_cur[:, :D], adj_cur, None, batch))

        x_out = x_cur[:, :D]
        # TODO(synk): torch.stack(layer_data, dim=1) over heterogeneous (x, edge_index,
        #             edge_attr, batch) tuples is not representable (it also errors in
        #             PyTorch); the per-layer list is returned instead.
        return x_out, x_out, layer_data, adj_cur, batch


# ----------------------------------------------------------------------------- #
if __name__ == "__main__":
    key = jax.random.PRNGKey(0)
    kx, kp = jax.random.split(key, 2)

    N, F = 16, 8                     # small synthetic graph
    x = jax.random.normal(kx, (N, F), jnp.float32)
    src = jnp.arange(N, dtype=jnp.int32)
    # deterministic directed edges: i -> i+1 and i -> i+3 (mod N)
    edge_index = jnp.stack(
        [jnp.concatenate([src, src]),
         jnp.concatenate([(src + 1) % N, (src + 3) % N])], axis=0)

    model = GraphEncoderNormPoolingPallas(num_features=F, embedding_size=32,
                                          num_layers=4, key=kp)
    out_x, out_x2, layer_data, final_adj, final_batch = model(x, edge_index)
    jax.block_until_ready(out_x)
    jax.block_until_ready(final_adj)
    print("KERNEL_OK")
</pallas_src>

<mosaic_0001>
module attributes {stable_mosaic.version = 11 : i64} {
  func.func @kernel(%arg0: memref<16x8xf32, #tpu.memory_space<vmem>>, %arg1: memref<8x128xf32, #tpu.memory_space<vmem>>, %arg2: memref<1x128xf32, #tpu.memory_space<vmem>>, %arg3: memref<128x128xf32, #tpu.memory_space<vmem>>, %arg4: memref<16x128xf32, #tpu.memory_space<vmem>>) attributes {dimension_semantics = [], scalar_prefetch = 0 : i64, scratch_operands = 0 : i64, tpu.core_type = #tpu.core_type<tc>} {
    %c0 = arith.constant 0 : index
    %c0_0 = arith.constant 0 : index
    %0 = vector.load %arg0[%c0, %c0_0] : memref<16x8xf32, #tpu.memory_space<vmem>>, vector<16x8xf32>
    %c0_1 = arith.constant 0 : index
    %c0_2 = arith.constant 0 : index
    %1 = vector.load %arg1[%c0_1, %c0_2] : memref<8x128xf32, #tpu.memory_space<vmem>>, vector<8x128xf32>
    %cst = arith.constant dense<0.000000e+00> : vector<16x128xf32>
    %2 = tpu.matmul %0, %1, %cst {dimension_numbers = #tpu.dot_dimension_numbers<[1], [0], [0], [1], [0, 0, 1, 1], [], []>} : vector<16x8xf32>, vector<8x128xf32>, vector<16x128xf32> -> vector<16x128xf32>
    %c0_3 = arith.constant 0 : index
    %c0_4 = arith.constant 0 : index
    %3 = vector.load %arg2[%c0_3, %c0_4] : memref<1x128xf32, #tpu.memory_space<vmem>>, vector<1x128xf32>
    %4 = vector.broadcast %3 : vector<1x128xf32> to vector<16x128xf32>
    %5 = arith.addf %2, %4 : vector<16x128xf32>
    %cst_5 = arith.constant 0.000000e+00 : f32
    %6 = vector.broadcast %cst_5 : f32 to vector<16x128xf32>
    %7 = arith.cmpf ogt, %5, %6 : vector<16x128xf32>
    %cst_6 = arith.constant 0.00999999977 : f32
    %8 = vector.broadcast %cst_6 : f32 to vector<16x128xf32>
    %9 = arith.mulf %8, %5 : vector<16x128xf32>
    %10 = arith.select %7, %5, %9 : vector<16x128xi1>, vector<16x128xf32>
    %c0_7 = arith.constant 0 : index
    %c0_8 = arith.constant 0 : index
    %11 = vector.load %arg3[%c0_7, %c0_8] : memref<128x128xf32, #tpu.memory_space<vmem>>, vector<128x128xf32>
    %cst_9 = arith.constant dense<0.000000e+00> : vector<16x128xf32>
    %12 = tpu.matmul %10, %11, %cst_9 {dimension_numbers = #tpu.dot_dimension_numbers<[1], [0], [0], [1], [0, 0, 1, 1], [], []>} : vector<16x128xf32>, vector<128x128xf32>, vector<16x128xf32> -> vector<16x128xf32>
    %c0_10 = arith.constant 0 : index
    %c0_11 = arith.constant 0 : index
    %13 = vector.load %arg4[%c0_10, %c0_11] : memref<16x128xf32, #tpu.memory_space<vmem>>, vector<16x128xf32>
    tpu.vector_store %arg4[%c0_10, %c0_11], %12 {strides = array<i32>} : memref<16x128xf32, #tpu.memory_space<vmem>>, vector<16x128xf32>,
    return
  }
}

</mosaic_0001>

<bundles_post_ra>
// kernel: tpu_custom_call.1
= control target key start
LH: loop header
LB: loop body
LE: loop exit
PB: predicated region body
PF: predicated region fallthrough
CT: control target
= control target key end

     0   :  { %9 = vsyncpa [#allocation3], 0  ;;  %s405_s0 = inlined_call_operand.vmem [shape: f32[16,8], index: 0, kind: input, shape index: {}]   ;;  %s406_s1 = inlined_call_operand.vmem [shape: f32[8,128], index: 1, kind: input, shape index: {}]   ;;  %s407_s2 = inlined_call_operand.vmem [shape: f32[1,128], index: 2, kind: input, shape index: {}]   ;;  %s408_s3 = inlined_call_operand.hbm [shape: f32[128,128], index: 3, kind: input, shape index: {}]   ;;  %s409_s4 = inlined_call_operand.hbm [shape: f32[16,128], index: 4, kind: output, shape index: {}]  }
   0x1   :  { %10 = vsyncpa [#allocation4], 0  ;;  %s352_s15 = smov [#allocation2]  }
   0x2   :  { %s22_s16 = sshll.u32 %s352_s15, 4  ;;  %s23_s16 = int_to_ptr.vmem [resolvable:$true] %s22_s16 }
   0x3   :  { %s316_s17 = scalar_lea.vmem %s23_s16, 2048  ;;  %p321_p1 = scmp.lt.s32.totalorder %s23_s16, %s23_s16 }
   0x4   :  { %p317_p0 = scmp.ne.s32.totalorder %s23_s16, %s316_s17  ;;  %p322_p2 = scmp.lt.s32.totalorder %s316_s17, %s316_s17 }
   0x6   :  { %p323_p3 = por %p322_p2, %p321_p1 }
   0x8   :  { %p324_p4 = pnand %p323_p3, %p317_p0 }
   0xa   :  { %327 = shalt.err (!%p324_p4)
}
   0xb   :  { %s353_s18 = smov 128   ;;  %s354_s19 = smov 8  }
   0xc   :  { %28 = dma.hbm_to_vmem [thread:$0]  %s408_s3, 2048, %s23_s16, [#allocation3], %s353_s18, %s353_s18, %s354_s19  }
   0xd   :  { %348 = dma.done.wait [#allocation3], 2048  }
   0xe   :  { %349 = vsyncadd [#allocation3], 4294965248  ;;  %vm42_vm0 = vcmask 64512   ;;  %v34_v0 = vld [vmem:[%s406_s1] sm:$0xff]  ;;  %v33_v2 = vld [vmem:[%s405_s0 + $0x8] sm:$0xff]  ;;  %s355_s3 = smov [#allocation5]  }
   0xf   :  { %v32_v1 = vld [vmem:[%s405_s0] sm:$0xff]  ;;  %264 = vmatprep.subr.mxu0 %v34_v0  ;;  %v145_v3 = vld [vmem:[#allocation2 + $0x78] sm:$0xff]  ;;  %v144_v4 = vld [vmem:[#allocation2 + $0x70] sm:$0xff]  ;;  %s228_s28 = sshll.u32 %s355_s3, 4  ;;  %s229_s28 = int_to_ptr.vmem [resolvable:$true] %s228_s28 }
  0x10   :  { %266 = vmatprep.mubr.msk.f32.mxu0 %vm42_vm0, %v32_v1  ;;  %265 = vmatpush3.msra.mxu0 %v34_v0  ;;  %v143_v5 = vld [vmem:[#allocation2 + $0x68] sm:$0xff]  ;;  %v142_v6 = vld [vmem:[#allocation2 + $0x60] sm:$0xff]  ;;  %v141_v7 = vld [vmem:[#allocation2 + $0x58] sm:$0xff]  ;;  %p333_p6 = scmp.lt.s32.totalorder %s229_s28, %s229_s28 }
  0x11   :  { %269 = vmatprep.subr.mxu1 %v145_v3  ;;  %267 = vmatmul.mubr.msk.f32.vlgmr.msra.gmra.mxu0 %vm42_vm0, %v33_v2  ;;  %v140_v8 = vld [vmem:[#allocation2 + $0x50] sm:$0xff]  ;;  %v139_v9 = vld [vmem:[#allocation2 + $0x48] sm:$0xff]  ;;  %v138_v10 = vld [vmem:[#allocation2 + $0x40] sm:$0xff] }
  0x12   :  { %270 = vmatpush3.msra.mxu1 %v145_v3  ;;  %v137_v11 = vld [vmem:[#allocation2 + $0x38] sm:$0xff]  ;;  %v136_v12 = vld [vmem:[#allocation2 + $0x30] sm:$0xff]  ;;  %v135_v13 = vld [vmem:[#allocation2 + $0x28] sm:$0xff] }
  0x13   :  { %271 = vmatprep.subr.mxu1 %v144_v4  ;;  %v134_v14 = vld [vmem:[#allocation2 + $0x20] sm:$0xff]  ;;  %v133_v15 = vld [vmem:[#allocation2 + $0x18] sm:$0xff]  ;;  %v132_v16 = vld [vmem:[#allocation2 + $0x10] sm:$0xff] }
  0x14   :  { %272 = vmatpush3.msra.mxu1 %v144_v4  ;;  %v131_v17 = vld [vmem:[#allocation2 + $0x8] sm:$0xff]  ;;  %v130_v18 = vld [vmem:[#allocation2] sm:$0xff] }
  0x15   :  { %273 = vmatprep.subr.mxu1 %v143_v5  ;;  %v240_v19 = vld [vmem:[%s407_s2] ss:$0 sm:$0xff]  ;;  %s328_s2 = scalar_lea.vmem %s229_s28, 256 }
  0x16   :  { %274 = vmatpush3.msra.mxu1 %v143_v5  ;;  %p329_p5 = scmp.ne.s32.totalorder %s229_s28, %s328_s2  ;;  %p334_p7 = scmp.lt.s32.totalorder %s328_s2, %s328_s2 }
  0x17   :  { %275 = vmatprep.subr.mxu1 %v142_v6 }
  0x18   :  { %276 = vmatpush3.msra.mxu1 %v142_v6  ;;  %p335_p8 = por %p334_p7, %p333_p6 }
  0x19   :  { %277 = vmatprep.subr.mxu1 %v141_v7 }
  0x1a   :  { %278 = vmatpush3.msra.mxu1 %v141_v7  ;;  %p336_p9 = pnand %p335_p8, %p329_p5 }
  0x1b   :  { %279 = vmatprep.subr.mxu1 %v140_v8 }
  0x1c   :  { %280 = vmatpush3.msra.mxu1 %v140_v8 }
  0x1d   :  { %281 = vmatprep.subr.mxu1 %v139_v9 }
  0x1e   :  { %282 = vmatpush3.msra.mxu1 %v139_v9 }
  0x1f   :  { %283 = vmatprep.subr.mxu1 %v138_v10 }
  0x20   :  { %284 = vmatpush3.msra.mxu1 %v138_v10 }
  0x21   :  { %285 = vmatprep.subr.mxu1 %v137_v11 }
  0x22   :  { %286 = vmatpush3.msra.mxu1 %v137_v11 }
  0x23   :  { %287 = vmatprep.subr.mxu1 %v136_v12 }
  0x24   :  { %288 = vmatpush3.msra.mxu1 %v136_v12 }
  0x25   :  { %289 = vmatprep.subr.mxu1 %v135_v13 }
  0x26   :  { %290 = vmatpush3.msra.mxu1 %v135_v13 }
  0x27   :  { %291 = vmatprep.subr.mxu1 %v134_v14 }
  0x28   :  { %292 = vmatpush3.msra.mxu1 %v134_v14 }
  0x29   :  { %293 = vmatprep.subr.mxu1 %v133_v15 }
  0x2a   :  { %294 = vmatpush3.msra.mxu1 %v133_v15 }
  0x2b   :  { %295 = vmatprep.subr.mxu1 %v132_v16 }
  0x2c   :  { %296 = vmatpush3.msra.mxu1 %v132_v16 }
  0x2d   :  { %297 = vmatprep.subr.mxu1 %v131_v17 }
  0x2e   :  { %298 = vmatpush3.msra.mxu1 %v131_v17 }
  0x2f   :  { %299 = vmatprep.subr.mxu1 %v130_v18 }
  0x30   :  { %300 = vmatpush3.msra.mxu1 %v130_v18 }
  0xd1   :  { %v268_v20 = vpop.f32.mrf.mxu0 }
  0xd2   :  { %v121_v21 = vadd.f32 %v268_v20, %v240_v19 }
  0xd3   :  { %v115_v22 = vpop.f32.mrf.mxu0 }
  0xd4   :  { %v116_v23 = vadd.f32 %v240_v19, %v115_v22  ;;  %v127_v24 = vmul.f32 0.01, %v121_v21  ;;  %vm125_vm2 = vcmp.gt.f32.partialorder %v121_v21, 0.0 }
  0xd6   :  { %vm124_vm1 = vcmp.gt.f32.partialorder %v116_v23, 0.0  ;;  %v126_v25 = vmul.f32 0.01, %v116_v23  ;;  %v129_v27 = vsel %vm125_vm2, %v121_v21, %v127_v24 }
  0xd8   :  { %v128_v26 = vsel %vm124_vm1, %v116_v23, %v126_v25 }
  0xd9   :  { %301 = vmatprep.mubr.f32.mxu1 %v128_v26 }
  0xda   :  { %302 = vmatmul.mubr.f32.vlgmr.msra.gmra.mxu1 %v129_v27 }
 0x19a   :  { %v303_v28 = vpop.f32.mrf.mxu1 }
 0x19b   :  { %222 = vst [vmem:[#allocation5 + $0x8] sm:$0xff] %v303_v28 }
 0x19c   :  { %v212_v29 = vpop.f32.mrf.mxu1 }
 0x19d   :  { %221 = vst [vmem:[#allocation5] sm:$0xff] %v212_v29 }
 0x19e   :  { %339 = shalt.err (!%p336_p9)
}
 0x19f   :  { %234 = dma.vmem_to_hbm [thread:$0]  %s229_s28, 256, %s409_s4, [#allocation4], %s353_s18, %s353_s18, %s354_s19  }
 0x1a0   :  { %350 = dma.done.wait [#allocation4], 256  }
 0x1a1   :  { %351 = vsyncadd [#allocation4], 4294967040 }
 0x1a2   :  { %238 = vsyncpa [#allocation3], 1 }
 0x1a3   :  { %239 = vsyncpa [#allocation4], 1 }

</bundles_post_ra>
